<compile_context>
chip_gen: v7x
topology: tpu7x:2x2x1
jax: 0.10.0
libtpu: 0.0.40
codegen_flags: <defaults>
</compile_context>

<pallas_src>
import jax
import jax.numpy as jnp
from jax.experimental import pallas as pl
from jax.experimental.pallas import tpu as pltpu


# ------------------------------- kernel -------------------------------------

def attention_kernel(enc_ref, hid_ref, we_ref, wh_ref, ba_ref, v_ref, out_ref):
    tb, s = out_ref.shape            # batch tile, source length
    h = enc_ref.shape[-1]            # hidden size

    # (1) Encoder-side projection: ONE lane-dense batched MXU matmul over all
    #     (b, s) rows of this batch tile. bf16 x bf16 -> f32 accumulate.
    enc_proj = jnp.dot(enc_ref[...], we_ref[...],
                       preferred_element_type=jnp.float32)             # (TB*S, H)

    # (2) Hidden-side projection + bias, once per batch row, broadcast over S.
    hid_proj = jnp.dot(hid_ref[...], wh_ref[...],
                       preferred_element_type=jnp.float32) + ba_ref[...]  # (TB, H)

    # Split the flattened rows back into (TB, S, H); relayout-free when
    # S % 8 == 0 (minor dim H untouched).
    energy = jnp.tanh(enc_proj.reshape(tb, s, h) + hid_proj[:, None, :])  # f32

    # (3) v-projection (1/temperature pre-folded into v) as VPU multiply +
    #     lane (XLU) reduce.
    scores = jnp.sum(energy * v_ref[...][None, :, :], axis=-1)          # (TB, S)

    # (4) Numerically-stable softmax over source positions (lane axis).
    #     Exact f32 normalize so rows sum to 1 to f32 precision.
    m = jnp.max(scores, axis=-1, keepdims=True)
    e = jnp.exp(scores - m)
    denom = jnp.sum(e, axis=-1, keepdims=True)
    out_ref[...] = e * (1.0 / denom)


# ------------------------------- wrapper -------------------------------------

def _pick_block_b(batch, src_len, target_rows=512):
    """Largest divisor of `batch` whose tile has at most ~target_rows MXU rows."""
    best = 1
    for d in range(1, batch + 1):
        if batch % d == 0 and d * src_len <= max(target_rows, src_len):
            best = d
    return best


def attention_forward(encoder_outputs, hidden, params, *, temperature=5.0,
                      block_b=None):
    """encoder_outputs: (S, B, H); hidden: (L, B, H). Returns (B, S) weights."""
    S, B, H = encoder_outputs.shape
    if block_b is None:
        block_b = _pick_block_b(B, S)
    block_b = min(block_b, B)
    assert B % block_b == 0, (B, block_b)
    # TODO(synk): on v7x prefer B // block_b >= 2 so both TensorCores get work.

    # Layout / parameter plumbing (plain XLA, negligible cost). Matmul operands
    # go to bf16 (MXU-native); bias / v row stay f32.
    enc_flat = jnp.transpose(encoder_outputs, (1, 0, 2)).reshape(B * S, H)
    enc_flat = enc_flat.astype(jnp.bfloat16)                 # (B*S, H), b-major
    hid = hidden[-1].astype(jnp.bfloat16)                    # (B, H)

    w_attn = jnp.asarray(params["w_attn"], jnp.float32)      # (H, 2H) = Linear(2H,H).weight
    b_attn = jnp.asarray(params["b_attn"], jnp.float32)      # (H,)
    w_v = jnp.asarray(params["w_v"], jnp.float32)            # (1, H)  = Linear(H,1).weight
    # b_v dropped: softmax is shift-invariant, so it cancels exactly.

    wa_e = w_attn[:, :H].T.astype(jnp.bfloat16)              # (H, H) encoder half
    wa_h = w_attn[:, H:].T.astype(jnp.bfloat16)              # (H, H) hidden half
    ba = b_attn.reshape(1, H)                                # f32
    v_row = (w_v / float(temperature)).reshape(1, H)         # f32, temperature folded in

    # Explicit VMEM budget: double-buffered I/O tiles + resident weights +
    # f32 intermediates, with generous headroom; portable across v5e/v6e/v7x.
    tile_bytes = (2 * block_b * S * H * 2      # enc tile (bf16, 2x buffered)
                  + 2 * block_b * H * 2        # hid tile
                  + 2 * 2 * H * H * 2          # W_e, W_h
                  + 2 * 2 * H * 4              # bias + v row
                  + 2 * block_b * S * 4        # output tile
                  + 4 * block_b * S * H * 4)   # f32 intermediates (enc_proj, energy)
    vmem_limit = int(min(max(8 * tile_bytes, 16 * 1024 * 1024), 48 * 1024 * 1024))

    return pl.pallas_call(
        attention_kernel,
        out_shape=jax.ShapeDtypeStruct((B, S), jnp.float32),
        grid=(B // block_b,),
        in_specs=[
            pl.BlockSpec((block_b * S, H), lambda i: (i, 0)),  # flattened encoder rows
            pl.BlockSpec((block_b, H),     lambda i: (i, 0)),  # last-layer hidden tile
            pl.BlockSpec((H, H),           lambda i: (0, 0)),  # W_e (VMEM-resident)
            pl.BlockSpec((H, H),           lambda i: (0, 0)),  # W_h (VMEM-resident)
            pl.BlockSpec((1, H),           lambda i: (0, 0)),  # attn bias
            pl.BlockSpec((1, H),           lambda i: (0, 0)),  # v / temperature
        ],
        out_specs=pl.BlockSpec((block_b, S), lambda i: (i, 0)),
        compiler_params=pltpu.CompilerParams(
            dimension_semantics=("parallel",),
            vmem_limit_bytes=vmem_limit),
    )(enc_flat, hid, wa_e, wa_h, ba, v_row)


# ------------------------------- reference -----------------------------------

def attention_ref(encoder_outputs, hidden, w_attn, b_attn, w_v, b_v, t):
    """Pure-JAX transcription of the PyTorch module."""
    hid = hidden[-1]                                        # (B, H)
    enc = jnp.transpose(encoder_outputs, (1, 0, 2))         # (B, S, H)
    hid_rep = jnp.broadcast_to(hid[:, None, :], enc.shape)  # (B, S, H)
    cat = jnp.concatenate([enc, hid_rep], axis=-1)          # (B, S, 2H)
    energy = jnp.tanh(cat @ w_attn.T + b_attn)              # (B, S, H)
    attention = (energy @ w_v.T + b_v)[..., 0]              # (B, S)
    e = jnp.exp(attention / t)
    return e / jnp.sum(e, axis=1, keepdims=True)


# ------------------------------- main -----------------------------------------

if __name__ == "__main__":
    SRC_LEN, BATCH, HID, N_LAYERS = 8, 16, 32, 2
    TEMPERATURE = 5.0

    key = jax.random.PRNGKey(0)
    k1, k2, k3, k4, k5, k6 = jax.random.split(key, 6)

    encoder_outputs = jax.random.normal(k1, (SRC_LEN, BATCH, HID), jnp.float32)
    hidden = jax.random.normal(k2, (N_LAYERS, BATCH, HID), jnp.float32)
    params = {
        "w_attn": 0.1 * jax.random.normal(k3, (HID, 2 * HID), jnp.float32),
        "b_attn": 0.1 * jax.random.normal(k4, (HID,), jnp.float32),
        "w_v":    0.1 * jax.random.normal(k5, (1, HID), jnp.float32),
        "b_v":    0.1 * jax.random.normal(k6, (1,), jnp.float32),
    }

    out = attention_forward(encoder_outputs, hidden, params,
                            temperature=TEMPERATURE)
    out = jax.block_until_ready(out)

    ref = attention_ref(encoder_outputs, hidden, params["w_attn"],
                        params["b_attn"], params["w_v"], params["b_v"],
                        TEMPERATURE)

    assert out.shape == (BATCH, SRC_LEN), out.shape
    assert bool(jnp.all(jnp.isfinite(out)))
    max_err = float(jnp.max(jnp.abs(out - ref)))
    assert max_err < 2e-3, f"max abs err vs reference: {max_err}"
    row_err = float(jnp.max(jnp.abs(jnp.sum(out, axis=1) - 1.0)))
    assert row_err < 1e-3, f"row-sum err: {row_err}"

    print("KERNEL_OK")
</pallas_src>

<mosaic_0001>
module attributes {stable_mosaic.version = 11 : i64} {
  func.func @attention_kernel(%arg0: i32, %arg1: memref<128x32xbf16, #tpu.memory_space<vmem>>, %arg2: memref<16x32xbf16, #tpu.memory_space<vmem>>, %arg3: memref<32x32xbf16, #tpu.memory_space<vmem>>, %arg4: memref<32x32xbf16, #tpu.memory_space<vmem>>, %arg5: memref<1x32xf32, #tpu.memory_space<vmem>>, %arg6: memref<1x32xf32, #tpu.memory_space<vmem>>, %arg7: memref<16x8xf32, #tpu.memory_space<vmem>>) attributes {dimension_semantics = [#tpu.dimension_semantics<parallel>], iteration_bounds = array<i64: 1>, scalar_prefetch = 0 : i64, scratch_operands = 0 : i64, tpu.core_type = #tpu.core_type<tc>, window_params = [{transform_indices = @transform_0, window_bounds = array<i64: 128, 32>}, {transform_indices = @transform_1, window_bounds = array<i64: 16, 32>}, {pipeline_mode = #tpu.pipeline_mode<synchronous>, transform_indices = @transform_2, window_bounds = array<i64: 32, 32>}, {pipeline_mode = #tpu.pipeline_mode<synchronous>, transform_indices = @transform_3, window_bounds = array<i64: 32, 32>}, {pipeline_mode = #tpu.pipeline_mode<synchronous>, transform_indices = @transform_4, window_bounds = array<i64: 1, 32>}, {pipeline_mode = #tpu.pipeline_mode<synchronous>, transform_indices = @transform_5, window_bounds = array<i64: 1, 32>}, {transform_indices = @transform_6, window_bounds = array<i64: 16, 8>}]} {
    %c0 = arith.constant 0 : index
    %c0_0 = arith.constant 0 : index
    %0 = vector.load %arg1[%c0, %c0_0] : memref<128x32xbf16, #tpu.memory_space<vmem>>, vector<128x32xbf16>
    %c0_1 = arith.constant 0 : index
    %c0_2 = arith.constant 0 : index
    %1 = vector.load %arg3[%c0_1, %c0_2] : memref<32x32xbf16, #tpu.memory_space<vmem>>, vector<32x32xbf16>
    %cst = arith.constant dense<0.000000e+00> : vector<128x32xf32>
    %2 = tpu.matmul %0, %1, %cst {dimension_numbers = #tpu.dot_dimension_numbers<[1], [0], [0], [1], [0, 0, 1, 1], [], []>} : vector<128x32xbf16>, vector<32x32xbf16>, vector<128x32xf32> -> vector<128x32xf32>
    %c0_3 = arith.constant 0 : index
    %c0_4 = arith.constant 0 : index
    %3 = vector.load %arg2[%c0_3, %c0_4] : memref<16x32xbf16, #tpu.memory_space<vmem>>, vector<16x32xbf16>
    %c0_5 = arith.constant 0 : index
    %c0_6 = arith.constant 0 : index
    %4 = vector.load %arg4[%c0_5, %c0_6] : memref<32x32xbf16, #tpu.memory_space<vmem>>, vector<32x32xbf16>
    %cst_7 = arith.constant dense<0.000000e+00> : vector<16x32xf32>
    %5 = tpu.matmul %3, %4, %cst_7 {dimension_numbers = #tpu.dot_dimension_numbers<[1], [0], [0], [1], [0, 0, 1, 1], [], []>} : vector<16x32xbf16>, vector<32x32xbf16>, vector<16x32xf32> -> vector<16x32xf32>
    %c0_8 = arith.constant 0 : index
    %c0_9 = arith.constant 0 : index
    %6 = vector.load %arg5[%c0_8, %c0_9] : memref<1x32xf32, #tpu.memory_space<vmem>>, vector<1x32xf32>
    %7 = vector.broadcast %6 : vector<1x32xf32> to vector<16x32xf32>
    %8 = arith.addf %5, %7 : vector<16x32xf32>
    %9 = vector.shape_cast %2 : vector<128x32xf32> to vector<16x8x32xf32>
    %10 = vector.shape_cast %8 : vector<16x32xf32> to vector<16x1x32xf32>
    %11 = vector.broadcast %10 : vector<16x1x32xf32> to vector<16x8x32xf32>
    %12 = arith.addf %9, %11 : vector<16x8x32xf32>
    %13 = math.tanh %12 : vector<16x8x32xf32>
    %c0_10 = arith.constant 0 : index
    %c0_11 = arith.constant 0 : index
    %14 = vector.load %arg6[%c0_10, %c0_11] : memref<1x32xf32, #tpu.memory_space<vmem>>, vector<1x32xf32>
    %15 = vector.shape_cast %14 : vector<1x32xf32> to vector<1x1x32xf32>
    %16 = vector.broadcast %15 : vector<1x1x32xf32> to vector<16x8x32xf32>
    %17 = arith.mulf %13, %16 : vector<16x8x32xf32>
    %cst_12 = arith.constant dense<0.000000e+00> : vector<16x8xf32>
    %18 = vector.multi_reduction <add>, %17, %cst_12 [2] : vector<16x8x32xf32> to vector<16x8xf32>
    %cst_13 = arith.constant dense<0xFF800000> : vector<16xf32>
    %19 = vector.multi_reduction <maximumf>, %18, %cst_13 [1] : vector<16x8xf32> to vector<16xf32>
    %20 = vector.shape_cast %19 : vector<16xf32> to vector<16x1xf32>
    %21 = vector.broadcast %20 : vector<16x1xf32> to vector<16x8xf32>
    %22 = arith.subf %18, %21 : vector<16x8xf32>
    %23 = math.exp %22 : vector<16x8xf32>
    %cst_14 = arith.constant dense<0.000000e+00> : vector<16xf32>
    %24 = vector.multi_reduction <add>, %23, %cst_14 [1] : vector<16x8xf32> to vector<16xf32>
    %25 = vector.shape_cast %24 : vector<16xf32> to vector<16x1xf32>
    %cst_15 = arith.constant 1.000000e+00 : f32
    %26 = vector.broadcast %cst_15 : f32 to vector<16x1xf32>
    %27 = arith.divf %26, %25 : vector<16x1xf32>
    %28 = vector.broadcast %27 : vector<16x1xf32> to vector<16x8xf32>
    %29 = arith.mulf %23, %28 : vector<16x8xf32>
    %c0_16 = arith.constant 0 : index
    %c0_17 = arith.constant 0 : index
    %30 = vector.load %arg7[%c0_16, %c0_17] : memref<16x8xf32, #tpu.memory_space<vmem>>, vector<16x8xf32>
    tpu.vector_store %arg7[%c0_16, %c0_17], %29 {strides = array<i32>} : memref<16x8xf32, #tpu.memory_space<vmem>>, vector<16x8xf32>,
    return
  }
  func.func @transform_0(%arg0: i32) -> (i32, i32) {
    %c0_i32 = arith.constant 0 : i32
    %c0_i32_0 = arith.constant 0 : i32
    return %arg0, %c0_i32 : i32, i32
  }
  func.func @transform_1(%arg0: i32) -> (i32, i32) {
    %c0_i32 = arith.constant 0 : i32
    %c0_i32_0 = arith.constant 0 : i32
    return %arg0, %c0_i32 : i32, i32
  }
  func.func @transform_2(%arg0: i32) -> (i32, i32) {
    %c0_i32 = arith.constant 0 : i32
    %c0_i32_0 = arith.constant 0 : i32
    %c0_i32_1 = arith.constant 0 : i32
    return %c0_i32, %c0_i32_0 : i32, i32
  }
  func.func @transform_3(%arg0: i32) -> (i32, i32) {
    %c0_i32 = arith.constant 0 : i32
    %c0_i32_0 = arith.constant 0 : i32
    %c0_i32_1 = arith.constant 0 : i32
    return %c0_i32, %c0_i32_0 : i32, i32
  }
  func.func @transform_4(%arg0: i32) -> (i32, i32) {
    %c0_i32 = arith.constant 0 : i32
    %c0_i32_0 = arith.constant 0 : i32
    %c0_i32_1 = arith.constant 0 : i32
    return %c0_i32, %c0_i32_0 : i32, i32
  }
  func.func @transform_5(%arg0: i32) -> (i32, i32) {
    %c0_i32 = arith.constant 0 : i32
    %c0_i32_0 = arith.constant 0 : i32
    %c0_i32_1 = arith.constant 0 : i32
    return %c0_i32, %c0_i32_0 : i32, i32
  }
  func.func @transform_6(%arg0: i32) -> (i32, i32) {
    %c0_i32 = arith.constant 0 : i32
    %c0_i32_0 = arith.constant 0 : i32
    return %arg0, %c0_i32 : i32, i32
  }
}

</mosaic_0001>

<bundles_post_ra>
// kernel: tpu_custom_call.1
= control target key start
LH: loop header
LB: loop body
LE: loop exit
PB: predicated region body
PF: predicated region fallthrough
CT: control target
= control target key end

     0   :  { %vm96_vm0 = vcmask 261120   ;;  %v1375_v7 = vmov 0.0   ;;  %vm1376_vm1 = vmmov 0   ;;  %v1377_v14 = vmov 1966171168   ;;  %s1851_s2 = inlined_call_operand.vmem [shape: bf16[32,32], index: 2, kind: input, shape index: {}]   ;;  %s1852_s0 = inlined_call_operand.vmem [shape: bf16[128,32], index: 0, kind: input, shape index: {}]   ;;  %s1853_s3 = inlined_call_operand.vmem [shape: bf16[32,32], index: 3, kind: input, shape index: {}]   ;;  %s1854_s1 = inlined_call_operand.vmem [shape: bf16[16,32], index: 1, kind: input, shape index: {}]   ;;  %s1855_s4 = inlined_call_operand.vmem [shape: f32[1,32], index: 4, kind: input, shape index: {}]   ;;  %s1856_s5 = inlined_call_operand.vmem [shape: f32[1,32], index: 5, kind: input, shape index: {}]   ;;  %s1857_s6 = inlined_call_operand.vmem [shape: f32[16,8], index: 6, kind: output, shape index: {}]  }
   0x1   :  { %v1294_v0 = vld [vmem:[%s1851_s2] sm:$0xff]   ;;  %v1295_v1 = vld [vmem:[%s1851_s2 + $0x8] sm:$0xff]   ;;  %v1296_v2 = vld [vmem:[%s1852_s0 + $0x30] sm:$0xff]   ;;  %v296_v15 = vunpack.c.l.s4 %v1377_v14  ;;  %v298_v16 = vlaneseq  ;;  %vm657_vm2 = vcmask 1041409   ;;  %vm659_vm3 = vcmask 1042434  }
   0x2   :  { %1284 = vmatprep.subr.bf16.mxu1 %v1294_v0  ;;  %1256 = vmatprep.subr.bf16.mxu0 %v1294_v0  ;;  %v1297_v3 = vld [vmem:[%s1852_s0] sm:$0xff]   ;;  %v1298_v4 = vld [vmem:[%s1852_s0 + $0x38] sm:$0xff]   ;;  %v1299_v5 = vld [vmem:[%s1852_s0 + $0x8] sm:$0xff]   ;;  %vm661_vm4 = vcmask 1043459   ;;  %vm663_vm5 = vcmask 1044484   ;;  %vm665_vm6 = vcmask 1045509  }
   0x3   :  { %1286 = vmatpush3.bf16.msra.mxu1 %v1294_v0  ;;  %1257 = vmatpush3.bf16.msra.mxu0 %v1294_v0  ;;  %v1300_v6 = vld [vmem:[%s1853_s3] sm:$0xff]   ;;  %v1302_v8 = vld [vmem:[%s1852_s0 + $0x10] sm:$0xff]   ;;  %v1301_v9 = vld [vmem:[%s1853_s3 + $0x8] sm:$0xff]   ;;  %v297_v24 = vunpack.c.0.s8 %v296_v15  ;;  %v1467_v25 = vshrl.u32 %v298_v16, 7  ;;  %vm667_vm7 = vcmask 1046534   ;;  %vm669_vm8 = vcmask 1047559  }
   0x4   :  { %1285 = vmatprep.subr.bf16.mxu1 %v1295_v1  ;;  %1258 = vmatprep.subr.bf16.mxu0 %v1295_v1  ;;  %v1303_v10 = vld [vmem:[%s1854_s1] sm:$0xff]   ;;  %v1304_v11 = vld [vmem:[%s1852_s0 + $0x18] sm:$0xff]   ;;  %v1306_v13 = vld [vmem:[%s1852_s0 + $0x28] sm:$0xff]   ;;  %vm680_vm9 = vcmask 64512  }
   0x5   :  { %1272 = vmatprep.mubr.msk.bf16.mxu1 %vm96_vm0, %v1296_v2  ;;  %1260 = vmatprep.mubr.msk.bf16.mxu0 %vm96_vm0, %v1297_v3  ;;  %v1305_v12 = vld [vmem:[%s1852_s0 + $0x20] sm:$0xff]   ;;  %v1473_v28 = vsub.s32 %v297_v24, %v1467_v25  ;;  %v1479_v38 = vsub.s32 0, %v1467_v25 }
   0x6   :  { %v1237_v27 = vld [vmem:[%s1855_s4] ss:$0 sm:$0xff] }
   0x7   :  { %1287 = vmatpush3.bf16.msra.mxu1 %v1295_v1  ;;  %1259 = vmatpush3.bf16.msra.mxu0 %v1295_v1 }
   0x8   :  { %1276 = vmatprep.subr.bf16.mxu1 %v1375_v7 }
   0xa   :  { %1273 = vmatmul.mubr.msk.bf16.vlgmr.msra.gmra.mrb[0].mxu1 %vm96_vm0, %v1298_v4  ;;  %1261 = vmatmul.mubr.msk.bf16.vlgmr.msra.gmra.mrb[0].mxu0 %vm96_vm0, %v1299_v5 }
   0xb   :  { %1277 = vmatpush3.bf16.msra.mxu1 %v1300_v6  ;;  %1280 = vmatprep.mubr.msk.bf16.mxu1 %vm1376_vm1, %v1375_v7 }
   0xc   :  { %1278 = vmatprep.subr.bf16.mxu1 %v1375_v7  ;;  %1264 = vmatprep.mubr.msk.bf16.mxu0 %vm96_vm0, %v1302_v8 }
   0xf   :  { %1279 = vmatpush3.bf16.msra.mxu1 %v1301_v9 }
  0x12   :  { %1281 = vmatmul.mubr.msk.bf16.vlgmr.msra.gmra.mrb[4].mxu1 %vm96_vm0, %v1303_v10  ;;  %1265 = vmatmul.mubr.msk.bf16.gmra.mrb[4].mxu0 %vm96_vm0, %v1304_v11 }
  0x13   :  { %1268 = vmatprep.mubr.msk.bf16.mxu0 %vm96_vm0, %v1305_v12 }
  0x1a   :  { %1269 = vmatmul.mubr.msk.bf16.gmra.mrb[8].mxu0 %vm96_vm0, %v1306_v13 }
  0xdd   :  { %v1462_v17 = vpop.f32.mrb[0].mxu1  ;;  %v1262_v18 = vpop.f32.mrb[0].mxu0 }
  0xde   :  { %v203_v19 = vpop.f32.mrb[1].mxu1  ;;  %v155_v20 = vpop.f32.mrb[1].mxu0 }
  0xdf   :  { %v1464_v21 = vpop.f32.mrb[2].mxu1  ;;  %v1263_v22 = vpop.f32.mrb[2].mxu0 }
  0xe0   :  { %v206_v23 = vpop.f32.mrb[3].mxu1  ;;  %v158_v26 = vpop.f32.mrb[3].mxu0 }
  0xe5   :  { %v285_v29 = vpop.f32.mrb[4].mxu1  ;;  %v1266_v30 = vpop.f32.mrb[4].mxu0 }
  0xe6   :  { %v286_v31 = vadd.f32 %v1237_v27, %v285_v29  ;;  %v1282_v32 = vpop.f32.mrb[5].mxu1  ;;  %v171_v33 = vpop.f32.mrb[5].mxu0 }
  0xe7   :  { %v288_v34 = vpop.f32.mrb[6].mxu1  ;;  %v1475_v35 = vpop.f32.mrb[6].mxu0 }
  0xe8   :  { %v294_v36 = vcombine.high %v286_v31, %v286_v31  ;;  %v301_v37 = vrot.slane %v286_v31, %v1473_v28  ;;  %v289_v39 = vadd.f32 %v1237_v27, %v288_v34  ;;  %v1283_v40 = vpop.f32.mrb[7].mxu1  ;;  %v174_v41 = vpop.f32.mrb[7].mxu0 }
  0xea   :  { %v308_v42 = vrot.slane %v294_v36, %v1473_v28  ;;  %v309_v43 = vcombine.high %v301_v37, %v301_v37  ;;  %v317_v44 = vrot.slane %v301_v37, %v1473_v28  ;;  %v343_v45 = vcombine.high %v289_v39, %v289_v39 }
  0xeb   :  { %v350_v46 = vrot.slane %v289_v39, %v1473_v28 }
  0xec   :  { %v310_v47 = vcombine.high %v308_v42, %v308_v42  ;;  %v339_v48 = vcombine.high %v317_v44, %v317_v44  ;;  %v395_v49 = vrot.slane %v317_v44, %v1479_v38  ;;  %v357_v50 = vrot.slane %v343_v45, %v1473_v28 }
  0xed   :  { %v358_v51 = vcombine.high %v350_v46, %v350_v46  ;;  %v366_v52 = vrot.slane %v350_v46, %v1473_v28  ;;  %v331_v53 = vrot.slane %v309_v43, %v1473_v28  ;;  %v324_v54 = vrot.slane %v308_v42, %v1473_v28  ;;  %v1270_v55 = vpop.f32.mrb[8].mxu0 }
  0xee   :  { %v403_v56 = vrot.slane %v339_v48, %v1479_v38  ;;  %v472_v57 = vadd.f32 %v395_v49, %v155_v20  ;;  %v359_v58 = vcombine.high %v357_v50, %v357_v50  ;;  %v373_v59 = vrot.slane %v357_v50, %v1473_v28  ;;  %v187_v60 = vpop.f32.mrb[9].mxu0 }
  0xef   :  { %v341_v61 = vcombine.high %v331_v53, %v331_v53  ;;  %v399_v62 = vrot.slane %v331_v53, %v1479_v38  ;;  %v340_v63 = vcombine.high %v324_v54, %v324_v54  ;;  %v411_v0 = vrot.slane %v324_v54, %v1479_v38  ;;  %v1271_v1 = vpop.f32.mrb[10].mxu0 }
  0xf0   :  { %v474_v2 = vadd.f32 %v1262_v18, %v403_v56  ;;  %1307 = vtanh.f32 %v472_v57  ;;  %v387_v3 = vrot.slane %v359_v58, %v1473_v28  ;;  %v389_v4 = vcombine.high %v373_v59, %v373_v59  ;;  %v190_v5 = vpop.f32.mrb[11].mxu0 }
  0xf1   :  { %v443_v6 = vrot.slane %v373_v59, %v1479_v38  ;;  %v407_v7 = vrot.slane %v341_v61, %v1479_v38  ;;  %v473_v8 = vadd.f32 %v399_v62, %v158_v26  ;;  %v419_v9 = vrot.slane %v340_v63, %v1479_v38 }
  0xf2   :  { %1309 = vtanh.f32 %v474_v2  ;;  %v391_v10 = vcombine.high %v387_v3, %v387_v3  ;;  %v447_v11 = vrot.slane %v387_v3, %v1479_v38  ;;  %v451_v12 = vrot.slane %v389_v4, %v1479_v38 }
  0xf3   :  { %v484_v13 = vadd.f32 %v443_v6, %v203_v19  ;;  %v475_v14 = vadd.f32 %v1263_v22, %v407_v7  ;;  %1311 = vtanh.f32 %v473_v8  ;;  %v478_v15 = vadd.f32 %v1266_v30, %v419_v9 }
  0xf4   :  { %v455_v18 = vrot.slane %v391_v10, %v1479_v38  ;;  %v485_v20 = vadd.f32 %v447_v11, %v206_v23  ;;  %v1501_v24 = vadd.f32 %v1462_v17, %v451_v12  ;;  %v476_v27 = vadd.f32 %v411_v0, %v171_v33  ;;  %v1515_v33 = vld [vmem:[%s1856_s5] ss:$0 sm:$0xff] }
  0xf5   :  { %v338_v26 = vrot.slane %v310_v47, %v1473_v28  ;;  %v388_v29 = vcombine.high %v366_v52, %v366_v52  ;;  %v427_v31 = vrot.slane %v366_v52, %v1479_v38  ;;  %v380_v32 = vrot.slane %v358_v51, %v1473_v28 }
  0xf6   :  { %v1507_v34 = vadd.f32 %v1464_v21, %v455_v18  ;;  %1313 = vtanh.f32 %v476_v27 }
  0xf7   :  { %v342_v19 = vcombine.high %v338_v26, %v338_v26  ;;  %v415_v22 = vrot.slane %v338_v26, %v1479_v38  ;;  %v435_v30 = vrot.slane %v388_v29, %v1479_v38  ;;  %v480_v23 = vadd.f32 %v427_v31, %v187_v60 }
  0xf8   :  { %v390_v36 = vcombine.high %v380_v32, %v380_v32  ;;  %v431_v17 = vrot.slane %v380_v32, %v1479_v38  ;;  %1315 = vtanh.f32 %v475_v14 }
  0xf9   :  { %v423_v37 = vrot.slane %v342_v19, %v1479_v38  ;;  %v477_v28 = vadd.f32 %v415_v22, %v174_v41  ;;  %v482_v39 = vadd.f32 %v1270_v55, %v435_v30  ;;  %1317 = vtanh.f32 %v480_v23 }
  0xfa   :  { %v1308_v21 = vpop.eup %1307  ;;  %v439_v40 = vrot.slane %v390_v36, %v1479_v38  ;;  %v481_v42 = vadd.f32 %v431_v17, %v190_v5  ;;  %v592_v17 = vand.u32 127, %v298_v16 }
  0xfb   :  { %v479_v43 = vadd.f32 %v1475_v35, %v423_v37  ;;  %v511_v44 = vmul.f32 %v1308_v21, %v1515_v33  ;;  %1319 = vtanh.f32 %v477_v28 }
  0xfc   :  { %v1310_v45 = vpop.eup %1309  ;;  %v483_v46 = vadd.f32 %v1271_v1, %v439_v40  ;;  %1321 = vtanh.f32 %v481_v42 }
  0xfd   :  { %v1312_v47 = vpop.eup %1311  ;;  %v527_v48 = vsel %vm96_vm0, %v511_v44, 0.0  ;;  %v513_v50 = vmul.f32 %v1310_v45, %v1515_v33  ;;  %1323 = vtanh.f32 %v482_v39 }
  0xfe   :  { %528 = vadd.xlane.f32.xlu0 %v527_v48  ;;  %v512_v41 = vmul.f32 %v1312_v47, %v1515_v33  ;;  %1325 = vtanh.f32 %v478_v15 }
  0xff   :  { %v533_v51 = vsel %vm96_vm0, %v513_v50, 0.0  ;;  %1327 = vtanh.f32 %v484_v13 }
 0x100   :  { %v530_v49 = vsel %vm96_vm0, %v512_v41, 0.0  ;;  %v1314_v35 = vpop.eup %1313  ;;  %1329 = vtanh.f32 %v479_v43 }
 0x101   :  { %v515_v52 = vmul.f32 %v1314_v35, %v1515_v33  ;;  %1331 = vtanh.f32 %v483_v46 }
 0x102   :  { %531 = vadd.xlane.f32.xlu0 %v530_v49  ;;  %v1316_v53 = vpop.eup %1315  ;;  %1333 = vtanh.f32 %v485_v20 }
 0x103   :  { %v1318_v54 = vpop.eup %1317  ;;  %v539_v57 = vsel %vm96_vm0, %v515_v52, 0.0  ;;  %v514_v58 = vmul.f32 %v1316_v53, %v1515_v33  ;;  %1335 = vtanh.f32 %v1501_v24 }
 0x104   :  { %v519_v56 = vmul.f32 %v1318_v54, %v1515_v33  ;;  %1337 = vtanh.f32 %v1507_v34 }
 0x105   :  { %v1320_v55 = vpop.eup %1319  ;;  %v536_v63 = vsel %vm96_vm0, %v514_v58, 0.0 }
 0x106   :  { %534 = vadd.xlane.f32.xlu0 %v533_v51  ;;  %v1322_v59 = vpop.eup %1321  ;;  %v551_v60 = vsel %vm96_vm0, %v519_v56, 0.0  ;;  %v516_v0 = vmul.f32 %v1320_v55, %v1515_v33 }
 0x107   :  { %v520_v61 = vmul.f32 %v1322_v59, %v1515_v33  ;;  %v1324_v62 = vpop.eup %1323  ;;  %552 = vadd.xlane.f32.xlu1 %v551_v60 }
 0x108   :  { %v1326_v1 = vpop.eup %1325  ;;  %v521_v3 = vmul.f32 %v1324_v62, %v1515_v33  ;;  %v542_v5 = vsel %vm96_vm0, %v516_v0, 0.0 }
 0x109   :  { %v554_v2 = vsel %vm96_vm0, %v520_v61, 0.0  ;;  %v1328_v4 = vpop.eup %1327  ;;  %v517_v6 = vmul.f32 %v1326_v1, %v1515_v33 }
 0x10a   :  { %540 = vadd.xlane.f32.xlu0 %v539_v57  ;;  %v1330_v7 = vpop.eup %1329  ;;  %v557_v8 = vsel %vm96_vm0, %v521_v3, 0.0  ;;  %v523_v9 = vmul.f32 %v1328_v4, %v1515_v33 }
 0x10b   :  { %555 = vadd.xlane.f32.xlu1 %v554_v2  ;;  %v1332_v10 = vpop.eup %1331  ;;  %v545_v11 = vsel %vm96_vm0, %v517_v6, 0.0  ;;  %v518_v12 = vmul.f32 %v1330_v7, %v1515_v33 }
 0x10c   :  { %v563_v13 = vsel %vm96_vm0, %v523_v9, 0.0  ;;  %v522_v14 = vmul.f32 %v1332_v10, %v1515_v33  ;;  %v1334_v15 = vpop.eup %1333 }
 0x10d   :  { %v548_v18 = vsel %vm96_vm0, %v518_v12, 0.0  ;;  %v524_v24 = vmul.f32 %v1334_v15, %v1515_v33  ;;  %v1336_v27 = vpop.eup %1335  ;;  %v1639_v15 = vsub.s32 1, %v1467_v25 }
 0x10e   :  { %537 = vadd.xlane.f32.xlu0 %v536_v63  ;;  %v560_v20 = vsel %vm96_vm0, %v522_v14, 0.0  ;;  %v525_v29 = vmul.f32 %v1336_v27, %v1515_v33  ;;  %v1338_v31 = vpop.eup %1337  ;;  %v1378_v14 = vmov 0  }
 0x10f   :  { %558 = vadd.xlane.f32.xlu1 %v557_v8  ;;  %v566_v26 = vsel %vm96_vm0, %v524_v24, 0.0  ;;  %v526_v34 = vmul.f32 %v1338_v31, %v1515_v33  ;;  %v1568_v33 = vsub.s32 %v592_v17, %v1467_v25  ;;  %1292 = vset.pattern.permute.xlu0 %v1378_v14 }
 0x110   :  { %v569_v32 = vsel %vm96_vm0, %v525_v29, 0.0  ;;  %1293 = vset.pattern.permute.xlu1 %v1378_v14 }
 0x111   :  { %v572_v19 = vsel %vm96_vm0, %v526_v34, 0.0  ;;  %v1658_v34 = vsub.s32 4, %v1467_v25 }
 0x112   :  { %543 = vadd.xlane.f32.xlu0 %v542_v5 }
 0x113   :  { %564 = vadd.xlane.f32.xlu1 %v563_v13 }
 0x116   :  { %546 = vadd.xlane.f32.xlu0 %v545_v11 }
 0x117   :  { %561 = vadd.xlane.f32.xlu1 %v560_v20  ;;  %v1645_v20 = vsub.s32 3, %v1467_v25 }
 0x11a   :  { %549 = vadd.xlane.f32.xlu0 %v548_v18  ;;  %v1642_v18 = vsub.s32 2, %v1467_v25 }
 0x11b   :  { %567 = vadd.xlane.f32.xlu1 %v566_v26 }
 0x11f   :  { %570 = vadd.xlane.f32.xlu1 %v569_v32 }
 0x123   :  { %573 = vadd.xlane.f32.xlu1 %v572_v19 }
 0x18b   :  { %v1554_v22 = vpop.xlane.xlu0 %528 }
 0x18c   :  { %v596_v16 = vrot.slane %v1554_v22, %v1568_v33 }
 0x18f   :  { %v1556_v30 = vpop.xlane.xlu0 %531 }
 0x190   :  { %v600_v21 = vrot.slane %v1556_v30, %v1568_v33 }
 0x192   :  { %v658_v45 = vsel %vm657_vm2, %v600_v21, %v596_v16  ;;  %v1664_v16 = vsub.s32 5, %v1467_v25 }
 0x193   :  { %v1558_v23 = vpop.xlane.xlu0 %534 }
 0x194   :  { %v1563_v37 = vpop.xlane.xlu1 %552  ;;  %v604_v40 = vrot.slane %v1558_v23, %v1568_v33 }
 0x195   :  { %v628_v62 = vrot.slane %v1563_v37, %v1568_v33 }
 0x196   :  { %v660_v46 = vsel %vm659_vm3, %v604_v40, %v658_v45  ;;  %v1670_v45 = vsub.s32 6, %v1467_v25 }
 0x197   :  { %v1560_v36 = vpop.xlane.xlu0 %540 }
 0x198   :  { %v1570_v39 = vpop.xlane.xlu1 %555  ;;  %v612_v49 = vrot.slane %v1560_v36, %v1568_v33 }
 0x199   :  { %v632_v59 = vrot.slane %v1570_v39, %v1568_v33 }
 0x19b   :  { %v1565_v28 = vpop.xlane.xlu0 %537  ;;  %v671_v0 = vsel %vm657_vm2, %v632_v59, %v628_v62 }
 0x19c   :  { %v608_v43 = vrot.slane %v1565_v28, %v1568_v33  ;;  %v1582_v44 = vpop.xlane.xlu1 %558 }
 0x19d   :  { %v636_v60 = vrot.slane %v1582_v44, %v1568_v33 }
 0x19e   :  { %v662_v48 = vsel %vm661_vm4, %v608_v43, %v660_v46 }
 0x19f   :  { %v1576_v42 = vpop.xlane.xlu0 %543  ;;  %v664_v52 = vsel %vm663_vm5, %v612_v49, %v662_v48  ;;  %v672_v1 = vsel %vm659_vm3, %v636_v60, %v671_v0  ;;  %v1694_v0 = vsub.s32 7, %v1467_v25 }
 0x1a0   :  { %v616_v41 = vrot.slane %v1576_v42, %v1568_v33  ;;  %v1593_v50 = vpop.xlane.xlu1 %564 }
 0x1a1   :  { %v644_v5 = vrot.slane %v1593_v50, %v1568_v33 }
 0x1a2   :  { %v666_v54 = vsel %vm665_vm6, %v616_v41, %v664_v52 }
 0x1a3   :  { %v1586_v47 = vpop.xlane.xlu0 %546 }
 0x1a4   :  { %v620_v35 = vrot.slane %v1586_v47, %v1568_v33  ;;  %v1603_v55 = vpop.xlane.xlu1 %561 }
 0x1a5   :  { %v640_v63 = vrot.slane %v1603_v55, %v1568_v33 }
 0x1a6   :  { %v668_v56 = vsel %vm667_vm7, %v620_v35, %v666_v54 }
 0x1a7   :  { %v1597_v51 = vpop.xlane.xlu0 %549  ;;  %v673_v3 = vsel %vm661_vm4, %v640_v63, %v672_v1 }
 0x1a8   :  { %v624_v53 = vrot.slane %v1597_v51, %v1568_v33  ;;  %v1612_v61 = vpop.xlane.xlu1 %567  ;;  %v674_v8 = vsel %vm663_vm5, %v644_v5, %v673_v3 }
 0x1a9   :  { %v648_v4 = vrot.slane %v1612_v61, %v1568_v33 }
 0x1aa   :  { %v670_v57 = vsel %vm669_vm8, %v624_v53, %v668_v56 }
 0x1ab   :  { %v681_v58 = vsel %vm680_vm9, %v670_v57, -inf  ;;  %v675_v10 = vsel %vm665_vm6, %v648_v4, %v674_v8 }
 0x1ac   :  { %682 = vmax.xlane.f32.xlu0 %v681_v58  ;;  %v1620_v2 = vpop.xlane.xlu1 %570 }
 0x1ad   :  { %v652_v6 = vrot.slane %v1620_v2, %v1568_v33 }
 0x1af   :  { %v676_v11 = vsel %vm667_vm7, %v652_v6, %v675_v10 }
 0x1b0   :  { %v1629_v7 = vpop.xlane.xlu1 %573 }
 0x1b1   :  { %v656_v9 = vrot.slane %v1629_v7, %v1568_v33 }
 0x1b3   :  { %v677_v12 = vsel %vm669_vm8, %v656_v9, %v676_v11 }
 0x1b4   :  { %v684_v13 = vsel %vm680_vm9, %v677_v12, -inf }
 0x1b5   :  { %685 = vmax.xlane.f32.xlu1 %v684_v13 }
 0x239   :  { %v1647_v24 = vpop.xlane.xlu0 %682 }
 0x23a   :  { %v692_v27 = vrot.slane %v1647_v24, %v1479_v38  ;;  %v696_v26 = vrot.slane %v1647_v24, %v1639_v15  ;;  %v700_v29 = vrot.slane %v1647_v24, %v1642_v18  ;;  %v704_v19 = vrot.slane %v1647_v24, %v1645_v20 }
 0x23b   :  { %v708_v43 = vrot.slane %v1647_v24, %v1658_v34  ;;  %v712_v46 = vrot.slane %v1647_v24, %v1664_v16  ;;  %v716_v49 = vrot.slane %v1647_v24, %v1670_v45 }
 0x23c   :  { %v769_v31 = vsub.f32 %v1554_v22, %v692_v27  ;;  %v770_v32 = vsub.f32 %v1556_v30, %v696_v26  ;;  %v771_v17 = vsub.f32 %v1558_v23, %v700_v29  ;;  %v772_v22 = vsub.f32 %v1565_v28, %v704_v19 }
 0x23d   :  { %v773_v23 = vsub.f32 %v1560_v36, %v708_v43  ;;  %v774_v35 = vsub.f32 %v1576_v42, %v712_v46  ;;  %v775_v57 = vsub.f32 %v1586_v47, %v716_v49 }
 0x23e   :  { %v785_v21 = vmul.f32 1.442695, %v769_v31  ;;  %v787_v40 = vmul.f32 1.442695, %v770_v32  ;;  %v789_v30 = vmul.f32 1.442695, %v771_v17 }
 0x23f   :  { %v791_v48 = vmul.f32 1.442695, %v772_v22  ;;  %v793_v28 = vmul.f32 1.442695, %v773_v23  ;;  %v795_v42 = vmul.f32 1.442695, %v774_v35 }
 0x240   :  { %1339 = vpow2.f32 %v785_v21 }
 0x241   :  { %1341 = vpow2.f32 %v787_v40 }
 0x242   :  { %1343 = vpow2.f32 %v789_v30  ;;  %v686_v41 = vpop.xlane.xlu1 %685 }
 0x243   :  { %1345 = vpow2.f32 %v791_v48  ;;  %v740_v52 = vrot.slane %v686_v41, %v1658_v34  ;;  %v744_v54 = vrot.slane %v686_v41, %v1664_v16  ;;  %v724_v58 = vrot.slane %v686_v41, %v1479_v38 }
 0x244   :  { %1347 = vpow2.f32 %v793_v28  ;;  %v748_v59 = vrot.slane %v686_v41, %v1670_v45  ;;  %v728_v47 = vrot.slane %v686_v41, %v1639_v15  ;;  %v752_v3 = vrot.slane %v686_v41, %v1694_v0 }
 0x245   :  { %v781_v36 = vsub.f32 %v1593_v50, %v740_v52  ;;  %v782_v60 = vsub.f32 %v1612_v61, %v744_v54  ;;  %1349 = vpow2.f32 %v795_v42  ;;  %v797_v50 = vmul.f32 1.442695, %v775_v57 }
 0x246   :  { %v777_v1 = vsub.f32 %v1563_v37, %v724_v58  ;;  %v783_v4 = vsub.f32 %v1620_v2, %v748_v59  ;;  %v732_v25 = vrot.slane %v686_v41, %v1642_v18  ;;  %v778_v6 = vsub.f32 %v1570_v39, %v728_v47 }
 0x247   :  { %v809_v62 = vmul.f32 1.442695, %v781_v36  ;;  %v811_v61 = vmul.f32 1.442695, %v782_v60  ;;  %v784_v9 = vsub.f32 %v1629_v7, %v752_v3  ;;  %v736_v2 = vrot.slane %v686_v41, %v1645_v20 }
 0x248   :  { %v801_v8 = vmul.f32 1.442695, %v777_v1  ;;  %v813_v37 = vmul.f32 1.442695, %v783_v4  ;;  %v779_v11 = vsub.f32 %v1582_v44, %v732_v25  ;;  %v803_v12 = vmul.f32 1.442695, %v778_v6 }
 0x249   :  { %1351 = vpow2.f32 %v809_v62  ;;  %v815_v13 = vmul.f32 1.442695, %v784_v9  ;;  %v720_v7 = vrot.slane %v1647_v24, %v1694_v0  ;;  %v780_v27 = vsub.f32 %v1603_v55, %v736_v2 }
 0x24a   :  { %v1679_v53 = vpop.eup %1339  ;;  %1353 = vpow2.f32 %v797_v50  ;;  %v805_v26 = vmul.f32 1.442695, %v779_v11 }
 0x24b   :  { %v1682_v56 = vpop.eup %1341  ;;  %834 = vperm.xlu0 %1292, %v1679_v53   ;;  %1355 = vpow2.f32 %v811_v61  ;;  %v776_v31 = vsub.f32 %v1597_v51, %v720_v7  ;;  %v807_v32 = vmul.f32 1.442695, %v780_v27 }
 0x24c   :  { %837 = vperm.xlu1 %1293, %v1682_v56   ;;  %v1691_v63 = vpop.eup %1343  ;;  %1357 = vpow2.f32 %v801_v8 }
 0x24d   :  { %v1701_v5 = vpop.eup %1345  ;;  %1359 = vpow2.f32 %v813_v37  ;;  %v799_v19 = vmul.f32 1.442695, %v776_v31 }
 0x24e   :  { %v1707_v10 = vpop.eup %1347  ;;  %1361 = vpow2.f32 %v803_v12 }
 0x24f   :  { %v1712_v14 = vpop.eup %1349  ;;  %1363 = vpow2.f32 %v815_v13 }
 0x250   :  { %840 = vperm.xlu1 %1293, %v1691_v63   ;;  %1365 = vpow2.f32 %v805_v26 }
 0x251   :  { %1367 = vpow2.f32 %v807_v32 }
 0x252   :  { %1369 = vpow2.f32 %v799_v19 }
 0x253   :  { %v1714_v39 = vpop.eup %1351 }
 0x254   :  { %843 = vperm.xlu1 %1293, %v1701_v5   ;;  %870 = vperm.xlu0 %1292, %v1714_v39   ;;  %v1721_v44 = vpop.eup %1353 }
 0x255   :  { %v1723_v29 = vpop.eup %1355 }
 0x256   :  { %v1728_v24 = vpop.eup %1357 }
 0x257   :  { %v1730_v55 = vpop.eup %1359 }
 0x258   :  { %846 = vperm.xlu1 %1293, %v1707_v10   ;;  %873 = vperm.xlu0 %1292, %v1723_v29   ;;  %v1734_v17 = vpop.eup %1361 }
 0x259   :  { %v1736_v21 = vpop.eup %1363 }
 0x25a   :  { %v1740_v51 = vpop.eup %1365 }
 0x25b   :  { %v1743_v40 = vpop.eup %1367 }
 0x25c   :  { %849 = vperm.xlu1 %1293, %v1712_v14   ;;  %876 = vperm.xlu0 %1292, %v1730_v55   ;;  %v1746_v43 = vpop.eup %1369 }
 0x260   :  { %852 = vperm.xlu1 %1293, %v1721_v44   ;;  %879 = vperm.xlu0 %1292, %v1736_v21  }
 0x264   :  { %858 = vperm.xlu1 %1293, %v1728_v24  }
 0x268   :  { %861 = vperm.xlu1 %1293, %v1734_v17  }
 0x26c   :  { %864 = vperm.xlu1 %1293, %v1740_v51  }
 0x270   :  { %867 = vperm.xlu1 %1293, %v1743_v40  }
 0x274   :  { %855 = vperm.xlu1 %1293, %v1746_v43  }
 0x2ca   :  { %v835_v48 = vpop.permute.xlu0 %834 }
 0x2cb   :  { %v838_v22 = vpop.permute.xlu1 %837  ;;  %v884_v42 = vrot.slane %v835_v48, %v1568_v33 }
 0x2cc   :  { %v888_v58 = vrot.slane %v838_v22, %v1568_v33 }
 0x2ce   :  { %v945_v4 = vsel %vm657_vm2, %v888_v58, %v884_v42 }
 0x2cf   :  { %v841_v30 = vpop.permute.xlu1 %840 }
 0x2d0   :  { %v892_v60 = vrot.slane %v841_v30, %v1568_v33 }
 0x2d2   :  { %v946_v9 = vsel %vm659_vm3, %v892_v60, %v945_v4 }
 0x2d3   :  { %v844_v46 = vpop.permute.xlu1 %843  ;;  %v871_v49 = vpop.permute.xlu0 %870 }
 0x2d4   :  { %v896_v50 = vrot.slane %v844_v46, %v1568_v33  ;;  %v932_v8 = vrot.slane %v871_v49, %v1568_v33 }
 0x2d6   :  { %v947_v13 = vsel %vm661_vm4, %v896_v50, %v946_v9 }
 0x2d7   :  { %v847_v23 = vpop.permute.xlu1 %846  ;;  %v874_v52 = vpop.permute.xlu0 %873 }
 0x2d8   :  { %v900_v1 = vrot.slane %v847_v23, %v1568_v33  ;;  %v936_v12 = vrot.slane %v874_v52, %v1568_v33 }
 0x2da   :  { %v948_v26 = vsel %vm663_vm5, %v900_v1, %v947_v13 }
 0x2db   :  { %v850_v41 = vpop.permute.xlu1 %849  ;;  %v877_v36 = vpop.permute.xlu0 %876 }
 0x2dc   :  { %v904_v61 = vrot.slane %v850_v41, %v1568_v33  ;;  %v940_v27 = vrot.slane %v877_v36, %v1568_v33 }
 0x2de   :  { %v949_v22 = vsel %vm665_vm6, %v904_v61, %v948_v26 }
 0x2df   :  { %v853_v35 = vpop.permute.xlu1 %852  ;;  %v880_v37 = vpop.permute.xlu0 %879 }
 0x2e0   :  { %v908_v2 = vrot.slane %v853_v35, %v1568_v33  ;;  %v944_v19 = vrot.slane %v880_v37, %v1568_v33 }
 0x2e2   :  { %v950_v48 = vsel %vm667_vm7, %v908_v2, %v949_v22 }
 0x2e3   :  { %v859_v28 = vpop.permute.xlu1 %858 }
 0x2e4   :  { %v916_v47 = vrot.slane %v859_v28, %v1568_v33 }
 0x2e7   :  { %v862_v54 = vpop.permute.xlu1 %861 }
 0x2e8   :  { %v920_v59 = vrot.slane %v862_v54, %v1568_v33 }
 0x2ea   :  { %v952_v25 = vsel %vm657_vm2, %v920_v59, %v916_v47 }
 0x2eb   :  { %v865_v57 = vpop.permute.xlu1 %864 }
 0x2ec   :  { %v924_v62 = vrot.slane %v865_v57, %v1568_v33 }
 0x2ee   :  { %v953_v11 = vsel %vm659_vm3, %v924_v62, %v952_v25 }
 0x2ef   :  { %v868_v3 = vpop.permute.xlu1 %867 }
 0x2f0   :  { %v928_v6 = vrot.slane %v868_v3, %v1568_v33 }
 0x2f2   :  { %v954_v7 = vsel %vm661_vm4, %v928_v6, %v953_v11 }
 0x2f3   :  { %v955_v31 = vsel %vm663_vm5, %v932_v8, %v954_v7  ;;  %v856_v32 = vpop.permute.xlu1 %855 }
 0x2f4   :  { %v912_v30 = vrot.slane %v856_v32, %v1568_v33  ;;  %v956_v46 = vsel %vm665_vm6, %v936_v12, %v955_v31 }
 0x2f5   :  { %v957_v23 = vsel %vm667_vm7, %v940_v27, %v956_v46 }
 0x2f6   :  { %v958_v41 = vsel %vm669_vm8, %v944_v19, %v957_v23  ;;  %v951_v49 = vsel %vm669_vm8, %v912_v30, %v950_v48 }
 0x2f7   :  { %v964_v35 = vsel %vm680_vm9, %v958_v41, 0.0  ;;  %v961_v28 = vsel %vm680_vm9, %v951_v49, 0.0 }
 0x2f8   :  { %965 = vadd.xlane.f32.xlu0 %v964_v35  ;;  %962 = vadd.xlane.f32.xlu1 %v961_v28 }
 0x385   :  { %v966_v52 = vpop.xlane.xlu0 %965  ;;  %v963_v54 = vpop.xlane.xlu1 %962 }
 0x386   :  { %1371 = vrcp.f32 %v966_v52 }
 0x387   :  { %1373 = vrcp.f32 %v963_v54 }
 0x390   :  { %v1372_v36 = vpop.eup %1371 }
 0x391   :  { %v1374_v57 = vpop.eup %1373  ;;  %v1012_v50 = vrot.slane %v1372_v36, %v1639_v15  ;;  %v1016_v4 = vrot.slane %v1372_v36, %v1642_v18  ;;  %v1008_v6 = vrot.slane %v1372_v36, %v1479_v38 }
 0x392   :  { %v980_v42 = vrot.slane %v1374_v57, %v1639_v15  ;;  %v976_v58 = vrot.slane %v1374_v57, %v1479_v38  ;;  %v984_v62 = vrot.slane %v1374_v57, %v1642_v18  ;;  %v988_v3 = vrot.slane %v1374_v57, %v1645_v20 }
 0x393   :  { %v1062_v1 = vmul.f32 %v1734_v17, %v1012_v50  ;;  %v992_v61 = vrot.slane %v1374_v57, %v1658_v34  ;;  %v1020_v15 = vrot.slane %v1372_v36, %v1645_v20  ;;  %v996_v25 = vrot.slane %v1374_v57, %v1664_v16 }
 0x394   :  { %v1054_v59 = vmul.f32 %v1682_v56, %v980_v42  ;;  %v1053_v60 = vmul.f32 %v1679_v53, %v976_v58  ;;  %v1055_v47 = vmul.f32 %v1691_v63, %v984_v62  ;;  %v1056_v56 = vmul.f32 %v1701_v5, %v988_v3 }
 0x395   :  { %v1063_v53 = vmul.f32 %v1740_v51, %v1016_v4  ;;  %v1057_v63 = vmul.f32 %v1707_v10, %v992_v61  ;;  %v1064_v17 = vmul.f32 %v1743_v40, %v1020_v15  ;;  %v1024_v18 = vrot.slane %v1372_v36, %v1658_v34 }
 0x396   :  { %1089 = vperm.xlu1 %1293, %v1054_v59   ;;  %1086 = vperm.xlu0 %1292, %v1053_v60   ;;  %v1058_v5 = vmul.f32 %v1712_v14, %v996_v25  ;;  %v1028_v20 = vrot.slane %v1372_v36, %v1664_v16  ;;  %v1061_v10 = vmul.f32 %v1728_v24, %v1008_v6 }
 0x397   :  { %v1065_v51 = vmul.f32 %v1714_v39, %v1024_v18  ;;  %v1000_v8 = vrot.slane %v1374_v57, %v1670_v45  ;;  %v1032_v34 = vrot.slane %v1372_v36, %v1670_v45  ;;  %v1004_v38 = vrot.slane %v1374_v57, %v1694_v0 }
 0x398   :  { %v1066_v40 = vmul.f32 %v1723_v29, %v1028_v20  ;;  %v1036_v16 = vrot.slane %v1372_v36, %v1694_v0 }
 0x399   :  { %v1059_v14 = vmul.f32 %v1721_v44, %v1000_v8  ;;  %v1067_v39 = vmul.f32 %v1730_v55, %v1032_v34  ;;  %v1060_v24 = vmul.f32 %v1746_v43, %v1004_v38 }
 0x39a   :  { %1092 = vperm.xlu1 %1293, %v1055_v47   ;;  %1113 = vperm.xlu0 %1292, %v1062_v1   ;;  %v1068_v29 = vmul.f32 %v1736_v21, %v1036_v16 }
 0x39e   :  { %1095 = vperm.xlu1 %1293, %v1056_v56   ;;  %1116 = vperm.xlu0 %1292, %v1063_v53  }
 0x3a2   :  { %1098 = vperm.xlu1 %1293, %v1057_v63   ;;  %1119 = vperm.xlu0 %1292, %v1064_v17  }
 0x3a6   :  { %1101 = vperm.xlu1 %1293, %v1058_v5   ;;  %1122 = vperm.xlu0 %1292, %v1065_v51  }
 0x3aa   :  { %1110 = vperm.xlu1 %1293, %v1061_v10   ;;  %1125 = vperm.xlu0 %1292, %v1066_v40  }
 0x3ae   :  { %1104 = vperm.xlu1 %1293, %v1059_v14   ;;  %1128 = vperm.xlu0 %1292, %v1067_v39  }
 0x3b2   :  { %1107 = vperm.xlu1 %1293, %v1060_v24   ;;  %1131 = vperm.xlu0 %1292, %v1068_v29  }
 0x415   :  { %v1090_v9 = vpop.permute.xlu1 %1089  ;;  %v1087_v45 = vpop.permute.xlu0 %1086 }
 0x416   :  { %v1140_v26 = vrot.slane %v1090_v9, %v1568_v33  ;;  %v1136_v43 = vrot.slane %v1087_v45, %v1568_v33 }
 0x418   :  { %v1197_v28 = vsel %vm657_vm2, %v1140_v26, %v1136_v43 }
 0x419   :  { %v1093_v37 = vpop.permute.xlu1 %1092  ;;  %v1114_v2 = vpop.permute.xlu0 %1113 }
 0x41a   :  { %v1172_v21 = vrot.slane %v1114_v2, %v1568_v33  ;;  %v1144_v32 = vrot.slane %v1093_v37, %v1568_v33 }
 0x41c   :  { %v1198_v57 = vsel %vm659_vm3, %v1144_v32, %v1197_v28 }
 0x41d   :  { %v1096_v11 = vpop.permute.xlu1 %1095  ;;  %v1117_v44 = vpop.permute.xlu0 %1116 }
 0x41e   :  { %v1176_v19 = vrot.slane %v1117_v44, %v1568_v33  ;;  %v1148_v22 = vrot.slane %v1096_v11, %v1568_v33 }
 0x420   :  { %v1199_v60 = vsel %vm661_vm4, %v1148_v22, %v1198_v57 }
 0x421   :  { %v1099_v12 = vpop.permute.xlu1 %1098  ;;  %v1120_v55 = vpop.permute.xlu0 %1119 }
 0x422   :  { %v1180_v30 = vrot.slane %v1120_v55, %v1568_v33  ;;  %v1152_v23 = vrot.slane %v1099_v12, %v1568_v33 }
 0x424   :  { %v1200_v50 = vsel %vm663_vm5, %v1152_v23, %v1199_v60 }
 0x425   :  { %v1102_v13 = vpop.permute.xlu1 %1101  ;;  %v1123_v7 = vpop.permute.xlu0 %1122 }
 0x426   :  { %v1184_v48 = vrot.slane %v1123_v7, %v1568_v33  ;;  %v1156_v52 = vrot.slane %v1102_v13, %v1568_v33 }
 0x428   :  { %v1201_v3 = vsel %vm665_vm6, %v1156_v52, %v1200_v50 }
 0x429   :  { %v1111_v27 = vpop.permute.xlu1 %1110  ;;  %v1126_v0 = vpop.permute.xlu0 %1125 }
 0x42a   :  { %v1168_v31 = vrot.slane %v1111_v27, %v1568_v33  ;;  %v1188_v36 = vrot.slane %v1126_v0, %v1568_v33 }
 0x42c   :  { %v1204_v46 = vsel %vm657_vm2, %v1172_v21, %v1168_v31 }
 0x42d   :  { %v1205_v41 = vsel %vm659_vm3, %v1176_v19, %v1204_v46  ;;  %v1105_v49 = vpop.permute.xlu1 %1104  ;;  %v1129_v35 = vpop.permute.xlu0 %1128 }
 0x42e   :  { %v1206_v54 = vsel %vm661_vm4, %v1180_v30, %v1205_v41  ;;  %v1160_v58 = vrot.slane %v1105_v49, %v1568_v33  ;;  %v1192_v59 = vrot.slane %v1129_v35, %v1568_v33 }
 0x42f   :  { %v1207_v42 = vsel %vm663_vm5, %v1184_v48, %v1206_v54 }
 0x430   :  { %v1208_v62 = vsel %vm665_vm6, %v1188_v36, %v1207_v42  ;;  %v1202_v53 = vsel %vm667_vm7, %v1160_v58, %v1201_v3 }
 0x431   :  { %v1108_v47 = vpop.permute.xlu1 %1107  ;;  %v1132_v1 = vpop.permute.xlu0 %1131  ;;  %v1209_v61 = vsel %vm667_vm7, %v1192_v59, %v1208_v62 }
 0x432   :  { %v1164_v4 = vrot.slane %v1108_v47, %v1568_v33  ;;  %v1196_v56 = vrot.slane %v1132_v1, %v1568_v33 }
 0x434   :  { %v1203_v15 = vsel %vm669_vm8, %v1164_v4, %v1202_v53  ;;  %v1210_v63 = vsel %vm669_vm8, %v1196_v56, %v1209_v61 }
 0x435   :  { %1213 = vst.msk [vmem:[%s1857_s6] sm:$0xff] %vm680_vm9, %v1203_v15  ;;  %1214 = vst.msk [vmem:[%s1857_s6 + $0x8] sm:$0xff] %vm680_vm9, %v1210_v63 }

</bundles_post_ra>
